<compile_context>
chip_gen: v7x
topology: tpu7x:2x2x1
jax: 0.10.0
libtpu: 0.0.40
codegen_flags: <defaults>
</compile_context>

<pallas_src>
import math

import jax
import jax.numpy as jnp
from jax.experimental import pallas as pl
from jax.experimental.pallas import tpu as pltpu

# --- hyperparameters (module defaults) --------------------------------------
A_GATE = 1.0
SIGMA = 0.5
TRAIN_GATES = 1.0          # module default training=True
LN_EPS = 1e-5

# Max batch rows processed per grid step (multiple of 8).  At bb=1024 the
# double-buffered x tile plus in-kernel temporaries stay well under the
# 48 MiB scoped-VMEM limit set below on every generation (v5e/v6e/v7x).
MAX_BLOCK_B = 1024


def _round_up(v, m):
    return ((v + m - 1) // m) * m


def lspin_kernel(x_ref, c_ref, weff_ref, beff_ref, noise_ref, out_ref):
    """One grid step processes one batch chunk.

    Shapes inside the kernel:
      x_ref     (BB, T, D)
      c_ref     (1, D)    = weightsd * ln_weight
      weff_ref  (T, T)    = W1 @ W2
      beff_ref  (1, T)    = sum(wd)*(b1@W2) + b2 + sum(wd*ln_bias)*colsum(Weff)
      noise_ref (BB, T)
      out_ref   (BB, T)
    """
    x = x_ref[...].astype(jnp.float32)                    # (BB, T, D)
    c = c_ref[...]                                        # (1, D)
    inv_d = 1.0 / x.shape[-1]

    # Three D-reductions; xn / (x - mean) never materialize.
    sx = jnp.sum(x, axis=-1)                              # (BB, T)
    sxx = jnp.sum(x * x, axis=-1)                         # (BB, T)
    scx = jnp.sum(x * c[None, :, :], axis=-1)             # (BB, T)

    mean = sx * inv_d
    var = sxx * inv_d - mean * mean                       # biased (torch LN)
    rstd = jax.lax.rsqrt(var + LN_EPS)
    c_sum = jnp.sum(c)
    s = rstd * (scx - mean * c_sum)                       # (BB, T)

    # alpha = tanh(s @ Weff + beff).  T is tiny (8): do the contraction on the
    # VPU in exact f32 (statically unrolled), avoiding MXU bf16 rounding.
    w = weff_ref[...]                                     # (T, T)
    acc = beff_ref[...]                                   # (1, T) -> broadcast
    n_tok = s.shape[1]
    for t in range(n_tok):
        acc = acc + s[:, t:t + 1] * w[t:t + 1, :]         # (BB,1)*(1,T)
    alpha = jnp.tanh(acc)                                 # (BB, T)

    # Stochastic gate (training): z = alpha + sigma * noise ; hard sigmoid.
    z = alpha + SIGMA * noise_ref[...] * TRAIN_GATES
    out_ref[...] = jnp.clip(A_GATE * z + 0.5, 0.0, 1.0).astype(out_ref.dtype)


def lspin_forward(x, w1, b1, w2, b2, wd, ln_w, ln_b, noise):
    B, T, D = x.shape
    hi = jax.lax.Precision.HIGHEST

    # ---- pre-fused parameters (tiny, computed once outside the kernel) -----
    wd_v = wd.reshape(D).astype(jnp.float32)              # weightsd (D,1)->(D,)
    weff = jnp.dot(w1, w2, precision=hi)                  # (T, T)
    wd_sum = jnp.sum(wd_v)                                 # sum_d wd[d]
    cb = jnp.sum(wd_v * ln_b)                              # sum_d wd[d]*ln_b[d]
    beff = (wd_sum * jnp.dot(b1, w2, precision=hi) + b2
            + cb * jnp.sum(weff, axis=0))                  # (T,)
    cvec = (wd_v * ln_w).reshape(1, D)                     # (1, D)
    beff_2d = beff.reshape(1, T)

    # ---- batch chunking -----------------------------------------------------
    # >= 2 balanced grid steps whenever possible so the "parallel" axis shards
    # across v7x's two TensorCores and the x DMA pipelines with compute.
    if B <= 8:
        bb = B                                             # single full-extent step
    else:
        bb = min(MAX_BLOCK_B, _round_up(pl.cdiv(B, 2), 8))
    grid = (pl.cdiv(B, bb),)

    rep2 = lambda b: (0, 0)        # replicated (small) operands
    grid_spec = pltpu.PrefetchScalarGridSpec(
        num_scalar_prefetch=0,
        grid=grid,
        in_specs=[
            pl.BlockSpec((bb, T, D), lambda b: (b, 0, 0)),   # x
            pl.BlockSpec((1, D), rep2),                      # cvec = wd*ln_w
            pl.BlockSpec((T, T), rep2),                      # Weff
            pl.BlockSpec((1, T), rep2),                      # beff
            pl.BlockSpec((bb, T), lambda b: (b, 0)),         # noise
        ],
        out_specs=pl.BlockSpec((bb, T), lambda b: (b, 0)),
    )

    return pl.pallas_call(
        lspin_kernel,
        out_shape=jax.ShapeDtypeStruct((B, T), jnp.float32),
        grid_spec=grid_spec,
        compiler_params=pltpu.CompilerParams(
            dimension_semantics=("parallel",),
            vmem_limit_bytes=48 * 1024 * 1024),
    )(x, cvec, weff, beff_2d, noise)


def lspin_reference(x, w1, b1, w2, b2, wd, ln_w, ln_b, noise):
    """Pure-JAX reference mirroring the PyTorch forward (original op order)."""
    hi = jax.lax.Precision.HIGHEST
    mean = jnp.mean(x, axis=-1, keepdims=True)
    var = jnp.mean((x - mean) ** 2, axis=-1, keepdims=True)
    xn = (x - mean) / jnp.sqrt(var + LN_EPS) * ln_w + ln_b
    h = jnp.einsum('btd,th->bdh', xn, w1, precision=hi) + b1   # (B, D, H)
    y = jnp.einsum('bdh,d->bh', h, wd[:, 0], precision=hi)     # (B, H)
    alpha = jnp.tanh(jnp.dot(y, w2, precision=hi) + b2)        # (B, T)
    z = alpha + SIGMA * noise * TRAIN_GATES
    return jnp.clip(A_GATE * z + 0.5, 0.0, 1.0)


if __name__ == "__main__":
    T, D, H = 8, 32, 128          # n_tokens, d_token, gating hidden

    key = jax.random.PRNGKey(0)
    kw1, kb1, kw2, kb2, kwd, klw, klb = jax.random.split(key, 7)

    # Kaiming-normal-like init (gain = sqrt(2/(1+a^2)), a=sqrt(5)); biases /
    # LN params given small non-zero values so the folded bias paths are
    # actually exercised by the check.
    gain = math.sqrt(2.0 / (1.0 + 5.0))
    w1 = jax.random.normal(kw1, (T, H), jnp.float32) * (gain / math.sqrt(H))
    b1 = jax.random.normal(kb1, (H,), jnp.float32) * 0.05
    w2 = jax.random.normal(kw2, (H, T), jnp.float32) * (gain / math.sqrt(T))
    b2 = jax.random.normal(kb2, (T,), jnp.float32) * 0.05
    wd = jax.random.normal(kwd, (D, 1), jnp.float32) * gain
    ln_w = 1.0 + 0.1 * jax.random.normal(klw, (D,), jnp.float32)
    ln_b = 0.05 * jax.random.normal(klb, (D,), jnp.float32)

    # Small module-sized batch (single grid step) + a larger batch that
    # exercises the multi-step "parallel" grid path.
    for B in (4, 32):
        kx, kn = jax.random.split(jax.random.PRNGKey(B), 2)
        x = jax.random.normal(kx, (B, T, D), dtype=jnp.float32)
        # deterministic stand-in for torch.randn base_noise (training mode)
        noise = jax.random.normal(kn, (B, T), dtype=jnp.float32)

        out = lspin_forward(x, w1, b1, w2, b2, wd, ln_w, ln_b, noise)
        out = jax.block_until_ready(out)

        ref = lspin_reference(x, w1, b1, w2, b2, wd, ln_w, ln_b, noise)
        assert out.shape == (B, T)
        assert jnp.allclose(out, ref, atol=2e-5, rtol=1e-4), \
            f"mismatch vs reference for B={B}"

    print("KERNEL_OK")
</pallas_src>

<mosaic_0001>
module attributes {stable_mosaic.version = 11 : i64} {
  func.func @lspin_kernel(%arg0: i32, %arg1: memref<4x8x32xf32, #tpu.memory_space<vmem>>, %arg2: memref<1x32xf32, #tpu.memory_space<vmem>>, %arg3: memref<8x8xf32, #tpu.memory_space<vmem>>, %arg4: memref<1x8xf32, #tpu.memory_space<vmem>>, %arg5: memref<4x8xf32, #tpu.memory_space<vmem>>, %arg6: memref<4x8xf32, #tpu.memory_space<vmem>>) attributes {dimension_semantics = [#tpu.dimension_semantics<parallel>], iteration_bounds = array<i64: 1>, scalar_prefetch = 0 : i64, scratch_operands = 0 : i64, tpu.core_type = #tpu.core_type<tc>, window_params = [{transform_indices = @transform_0, window_bounds = array<i64: 4, 8, 32>}, {pipeline_mode = #tpu.pipeline_mode<synchronous>, transform_indices = @transform_1, window_bounds = array<i64: 1, 32>}, {pipeline_mode = #tpu.pipeline_mode<synchronous>, transform_indices = @transform_2, window_bounds = array<i64: 8, 8>}, {pipeline_mode = #tpu.pipeline_mode<synchronous>, transform_indices = @transform_3, window_bounds = array<i64: 1, 8>}, {transform_indices = @transform_4, window_bounds = array<i64: 4, 8>}, {transform_indices = @transform_5, window_bounds = array<i64: 4, 8>}]} {
    %c0 = arith.constant 0 : index
    %c0_0 = arith.constant 0 : index
    %c0_1 = arith.constant 0 : index
    %0 = vector.load %arg1[%c0, %c0_0, %c0_1] : memref<4x8x32xf32, #tpu.memory_space<vmem>>, vector<4x8x32xf32>
    %c0_2 = arith.constant 0 : index
    %c0_3 = arith.constant 0 : index
    %1 = vector.load %arg2[%c0_2, %c0_3] : memref<1x32xf32, #tpu.memory_space<vmem>>, vector<1x32xf32>
    %cst = arith.constant dense<0.000000e+00> : vector<4x8xf32>
    %2 = vector.multi_reduction <add>, %0, %cst [2] : vector<4x8x32xf32> to vector<4x8xf32>
    %3 = arith.mulf %0, %0 : vector<4x8x32xf32>
    %cst_4 = arith.constant dense<0.000000e+00> : vector<4x8xf32>
    %4 = vector.multi_reduction <add>, %3, %cst_4 [2] : vector<4x8x32xf32> to vector<4x8xf32>
    %5 = vector.shape_cast %1 : vector<1x32xf32> to vector<1x1x32xf32>
    %6 = vector.broadcast %5 : vector<1x1x32xf32> to vector<4x8x32xf32>
    %7 = arith.mulf %0, %6 : vector<4x8x32xf32>
    %cst_5 = arith.constant dense<0.000000e+00> : vector<4x8xf32>
    %8 = vector.multi_reduction <add>, %7, %cst_5 [2] : vector<4x8x32xf32> to vector<4x8xf32>
    %cst_6 = arith.constant 3.125000e-02 : f32
    %9 = vector.broadcast %cst_6 : f32 to vector<4x8xf32>
    %10 = arith.mulf %2, %9 : vector<4x8xf32>
    %cst_7 = arith.constant 3.125000e-02 : f32
    %11 = vector.broadcast %cst_7 : f32 to vector<4x8xf32>
    %12 = arith.mulf %4, %11 : vector<4x8xf32>
    %13 = arith.mulf %10, %10 : vector<4x8xf32>
    %14 = arith.subf %12, %13 : vector<4x8xf32>
    %cst_8 = arith.constant 9.99999974E-6 : f32
    %15 = vector.broadcast %cst_8 : f32 to vector<4x8xf32>
    %16 = arith.addf %14, %15 : vector<4x8xf32>
    %17 = math.rsqrt %16 : vector<4x8xf32>
    %18 = vector.shape_cast %1 : vector<1x32xf32> to vector<1x1x32xf32>
    %cst_9 = arith.constant dense<0.000000e+00> : vector<1xf32>
    %19 = vector.multi_reduction <add>, %18, %cst_9 [1, 2] : vector<1x1x32xf32> to vector<1xf32>
    %20 = vector.shape_cast %19 : vector<1xf32> to vector<1x1x1xf32>
    %21 = vector.extract %20[0, 0, 0] : f32 from vector<1x1x1xf32>
    %22 = vector.broadcast %21 : f32 to vector<4x8xf32>
    %23 = arith.mulf %10, %22 : vector<4x8xf32>
    %24 = arith.subf %8, %23 : vector<4x8xf32>
    %25 = arith.mulf %17, %24 : vector<4x8xf32>
    %c0_10 = arith.constant 0 : index
    %c0_11 = arith.constant 0 : index
    %26 = vector.load %arg3[%c0_10, %c0_11] : memref<8x8xf32, #tpu.memory_space<vmem>>, vector<8x8xf32>
    %c0_12 = arith.constant 0 : index
    %c0_13 = arith.constant 0 : index
    %27 = vector.load %arg4[%c0_12, %c0_13] : memref<1x8xf32, #tpu.memory_space<vmem>>, vector<1x8xf32>
    %28 = vector.extract_strided_slice %25 {offsets = [0, 0], sizes = [4, 1], strides = [1, 1]} : vector<4x8xf32> to vector<4x1xf32>
    %29 = vector.extract_strided_slice %26 {offsets = [0, 0], sizes = [1, 8], strides = [1, 1]} : vector<8x8xf32> to vector<1x8xf32>
    %30 = vector.broadcast %28 : vector<4x1xf32> to vector<4x8xf32>
    %31 = vector.broadcast %29 : vector<1x8xf32> to vector<4x8xf32>
    %32 = arith.mulf %30, %31 : vector<4x8xf32>
    %33 = vector.broadcast %27 : vector<1x8xf32> to vector<4x8xf32>
    %34 = arith.addf %33, %32 : vector<4x8xf32>
    %35 = vector.extract_strided_slice %25 {offsets = [0, 1], sizes = [4, 1], strides = [1, 1]} : vector<4x8xf32> to vector<4x1xf32>
    %36 = vector.extract_strided_slice %26 {offsets = [1, 0], sizes = [1, 8], strides = [1, 1]} : vector<8x8xf32> to vector<1x8xf32>
    %37 = vector.broadcast %35 : vector<4x1xf32> to vector<4x8xf32>
    %38 = vector.broadcast %36 : vector<1x8xf32> to vector<4x8xf32>
    %39 = arith.mulf %37, %38 : vector<4x8xf32>
    %40 = arith.addf %34, %39 : vector<4x8xf32>
    %41 = vector.extract_strided_slice %25 {offsets = [0, 2], sizes = [4, 1], strides = [1, 1]} : vector<4x8xf32> to vector<4x1xf32>
    %42 = vector.extract_strided_slice %26 {offsets = [2, 0], sizes = [1, 8], strides = [1, 1]} : vector<8x8xf32> to vector<1x8xf32>
    %43 = vector.broadcast %41 : vector<4x1xf32> to vector<4x8xf32>
    %44 = vector.broadcast %42 : vector<1x8xf32> to vector<4x8xf32>
    %45 = arith.mulf %43, %44 : vector<4x8xf32>
    %46 = arith.addf %40, %45 : vector<4x8xf32>
    %47 = vector.extract_strided_slice %25 {offsets = [0, 3], sizes = [4, 1], strides = [1, 1]} : vector<4x8xf32> to vector<4x1xf32>
    %48 = vector.extract_strided_slice %26 {offsets = [3, 0], sizes = [1, 8], strides = [1, 1]} : vector<8x8xf32> to vector<1x8xf32>
    %49 = vector.broadcast %47 : vector<4x1xf32> to vector<4x8xf32>
    %50 = vector.broadcast %48 : vector<1x8xf32> to vector<4x8xf32>
    %51 = arith.mulf %49, %50 : vector<4x8xf32>
    %52 = arith.addf %46, %51 : vector<4x8xf32>
    %53 = vector.extract_strided_slice %25 {offsets = [0, 4], sizes = [4, 1], strides = [1, 1]} : vector<4x8xf32> to vector<4x1xf32>
    %54 = vector.extract_strided_slice %26 {offsets = [4, 0], sizes = [1, 8], strides = [1, 1]} : vector<8x8xf32> to vector<1x8xf32>
    %55 = vector.broadcast %53 : vector<4x1xf32> to vector<4x8xf32>
    %56 = vector.broadcast %54 : vector<1x8xf32> to vector<4x8xf32>
    %57 = arith.mulf %55, %56 : vector<4x8xf32>
    %58 = arith.addf %52, %57 : vector<4x8xf32>
    %59 = vector.extract_strided_slice %25 {offsets = [0, 5], sizes = [4, 1], strides = [1, 1]} : vector<4x8xf32> to vector<4x1xf32>
    %60 = vector.extract_strided_slice %26 {offsets = [5, 0], sizes = [1, 8], strides = [1, 1]} : vector<8x8xf32> to vector<1x8xf32>
    %61 = vector.broadcast %59 : vector<4x1xf32> to vector<4x8xf32>
    %62 = vector.broadcast %60 : vector<1x8xf32> to vector<4x8xf32>
    %63 = arith.mulf %61, %62 : vector<4x8xf32>
    %64 = arith.addf %58, %63 : vector<4x8xf32>
    %65 = vector.extract_strided_slice %25 {offsets = [0, 6], sizes = [4, 1], strides = [1, 1]} : vector<4x8xf32> to vector<4x1xf32>
    %66 = vector.extract_strided_slice %26 {offsets = [6, 0], sizes = [1, 8], strides = [1, 1]} : vector<8x8xf32> to vector<1x8xf32>
    %67 = vector.broadcast %65 : vector<4x1xf32> to vector<4x8xf32>
    %68 = vector.broadcast %66 : vector<1x8xf32> to vector<4x8xf32>
    %69 = arith.mulf %67, %68 : vector<4x8xf32>
    %70 = arith.addf %64, %69 : vector<4x8xf32>
    %71 = vector.extract_strided_slice %25 {offsets = [0, 7], sizes = [4, 1], strides = [1, 1]} : vector<4x8xf32> to vector<4x1xf32>
    %72 = vector.extract_strided_slice %26 {offsets = [7, 0], sizes = [1, 8], strides = [1, 1]} : vector<8x8xf32> to vector<1x8xf32>
    %73 = vector.broadcast %71 : vector<4x1xf32> to vector<4x8xf32>
    %74 = vector.broadcast %72 : vector<1x8xf32> to vector<4x8xf32>
    %75 = arith.mulf %73, %74 : vector<4x8xf32>
    %76 = arith.addf %70, %75 : vector<4x8xf32>
    %77 = math.tanh %76 : vector<4x8xf32>
    %c0_14 = arith.constant 0 : index
    %c0_15 = arith.constant 0 : index
    %78 = vector.load %arg5[%c0_14, %c0_15] : memref<4x8xf32, #tpu.memory_space<vmem>>, vector<4x8xf32>
    %cst_16 = arith.constant 5.000000e-01 : f32
    %79 = vector.broadcast %cst_16 : f32 to vector<4x8xf32>
    %80 = arith.mulf %79, %78 : vector<4x8xf32>
    %cst_17 = arith.constant 1.000000e+00 : f32
    %81 = vector.broadcast %cst_17 : f32 to vector<4x8xf32>
    %82 = arith.mulf %80, %81 : vector<4x8xf32>
    %83 = arith.addf %77, %82 : vector<4x8xf32>
    %cst_18 = arith.constant 1.000000e+00 : f32
    %84 = vector.broadcast %cst_18 : f32 to vector<4x8xf32>
    %85 = arith.mulf %84, %83 : vector<4x8xf32>
    %cst_19 = arith.constant 5.000000e-01 : f32
    %86 = vector.broadcast %cst_19 : f32 to vector<4x8xf32>
    %87 = arith.addf %85, %86 : vector<4x8xf32>
    %cst_20 = arith.constant 0.000000e+00 : f32
    %cst_21 = arith.constant 1.000000e+00 : f32
    %88 = vector.broadcast %cst_20 : f32 to vector<4x8xf32>
    %89 = arith.maximumf %88, %87 : vector<4x8xf32>
    %90 = vector.broadcast %cst_21 : f32 to vector<4x8xf32>
    %91 = arith.minimumf %90, %89 : vector<4x8xf32>
    %c0_22 = arith.constant 0 : index
    %c0_23 = arith.constant 0 : index
    %92 = vector.load %arg6[%c0_22, %c0_23] : memref<4x8xf32, #tpu.memory_space<vmem>>, vector<4x8xf32>
    tpu.vector_store %arg6[%c0_22, %c0_23], %91 {strides = array<i32>} : memref<4x8xf32, #tpu.memory_space<vmem>>, vector<4x8xf32>,
    return
  }
  func.func @transform_0(%arg0: i32) -> (i32, i32, i32) {
    %c0_i32 = arith.constant 0 : i32
    %c0_i32_0 = arith.constant 0 : i32
    %c0_i32_1 = arith.constant 0 : i32
    return %arg0, %c0_i32, %c0_i32_0 : i32, i32, i32
  }
  func.func @transform_1(%arg0: i32) -> (i32, i32) {
    %c0_i32 = arith.constant 0 : i32
    %c0_i32_0 = arith.constant 0 : i32
    %c0_i32_1 = arith.constant 0 : i32
    return %c0_i32, %c0_i32_0 : i32, i32
  }
  func.func @transform_2(%arg0: i32) -> (i32, i32) {
    %c0_i32 = arith.constant 0 : i32
    %c0_i32_0 = arith.constant 0 : i32
    %c0_i32_1 = arith.constant 0 : i32
    return %c0_i32, %c0_i32_0 : i32, i32
  }
  func.func @transform_3(%arg0: i32) -> (i32, i32) {
    %c0_i32 = arith.constant 0 : i32
    %c0_i32_0 = arith.constant 0 : i32
    %c0_i32_1 = arith.constant 0 : i32
    return %c0_i32, %c0_i32_0 : i32, i32
  }
  func.func @transform_4(%arg0: i32) -> (i32, i32) {
    %c0_i32 = arith.constant 0 : i32
    %c0_i32_0 = arith.constant 0 : i32
    return %arg0, %c0_i32 : i32, i32
  }
  func.func @transform_5(%arg0: i32) -> (i32, i32) {
    %c0_i32 = arith.constant 0 : i32
    %c0_i32_0 = arith.constant 0 : i32
    return %arg0, %c0_i32 : i32, i32
  }
}

</mosaic_0001>

<bundles_post_ra>
// kernel: tpu_custom_call.1
= control target key start
LH: loop header
LB: loop body
LE: loop exit
PB: predicated region body
PF: predicated region fallthrough
CT: control target
= control target key end

     0   :  { %10 = vsyncpa [#allocation3], 0  ;;  %s1069_s0 = inlined_call_operand.hbm [shape: f32[4,8,32], index: 0, kind: input, shape index: {}]   ;;  %s1070_s1 = inlined_call_operand.vmem [shape: f32[1,32], index: 1, kind: input, shape index: {}]   ;;  %s1071_s2 = inlined_call_operand.hbm [shape: f32[8,8], index: 2, kind: input, shape index: {}]   ;;  %s1072_s3 = inlined_call_operand.vmem [shape: f32[1,8], index: 3, kind: input, shape index: {}]   ;;  %s1073_s4 = inlined_call_operand.vmem [shape: f32[4,8], index: 4, kind: input, shape index: {}]   ;;  %s1074_s5 = inlined_call_operand.hbm [shape: f32[4,8], index: 5, kind: output, shape index: {}]  }
   0x1   :  { %11 = vsyncpa [#allocation6], 0 }
   0x2   :  { %12 = vsyncpa [#allocation4], 0  ;;  %s810_s18 = smov [#allocation2]   ;;  %s738_s22 = scalar_lea.hbm %s1069_s0, 512 }
   0x3   :  { %s18_s19 = sshll.u32 %s810_s18, 4  ;;  %p739_p0 = scmp.ne.s32.totalorder %s1069_s0, %s738_s22  ;;  %s19_s19 = int_to_ptr.vmem [resolvable:$true] %s18_s19 }
   0x4   :  { %p742_p1 = scmp.lt.u32.totalorder %s738_s22, %s1069_s0 }
   0x6   :  { %p744_p2 = pnand %p742_p1, %p739_p0 }
   0x8   :  { %747 = shalt.err (!%p744_p2)
}
   0x9   :  { %s748_s27 = scalar_lea.vmem %s19_s19, 512  ;;  %p753_p4 = scmp.lt.s32.totalorder %s19_s19, %s19_s19 }
   0xa   :  { %p749_p3 = scmp.ne.s32.totalorder %s19_s19, %s748_s27  ;;  %p754_p5 = scmp.lt.s32.totalorder %s748_s27, %s748_s27 }
   0xc   :  { %p755_p6 = por %p754_p5, %p753_p4 }
   0xe   :  { %p756_p7 = pnand %p755_p6, %p749_p3 }
  0x10   :  { %759 = shalt.err (!%p756_p7)
}
  0x11   :  { %s811_s28 = smov 128   ;;  %s812_s29 = smov 8  }
  0x12   :  { %24 = dma.hbm_to_vmem [thread:$0]  %s1069_s0, 512, %s19_s19, [#allocation3], %s811_s28, %s811_s28, %s812_s29  }
  0x13   :  { %s813_s7 = smov [#allocation5]   ;;  %s760_s11 = scalar_lea.hbm %s1071_s2, 128 }
  0x14   :  { %s33_s8 = sshll.u32 %s813_s7, 4  ;;  %p761_p8 = scmp.ne.s32.totalorder %s1071_s2, %s760_s11  ;;  %s34_s8 = int_to_ptr.vmem [resolvable:$true] %s33_s8 }
  0x15   :  { %p764_p9 = scmp.lt.u32.totalorder %s760_s11, %s1071_s2 }
  0x17   :  { %p766_p10 = pnand %p764_p9, %p761_p8 }
  0x19   :  { %769 = shalt.err (!%p766_p10)
}
  0x1a   :  { %s770_s16 = scalar_lea.vmem %s34_s8, 128  ;;  %p775_p12 = scmp.lt.s32.totalorder %s34_s8, %s34_s8 }
  0x1b   :  { %p771_p11 = scmp.ne.s32.totalorder %s34_s8, %s770_s16  ;;  %p776_p13 = scmp.lt.s32.totalorder %s770_s16, %s770_s16 }
  0x1d   :  { %p777_p0 = por %p776_p13, %p775_p12 }
  0x1f   :  { %p778_p1 = pnand %p777_p0, %p771_p11 }
  0x21   :  { %781 = shalt.err (!%p778_p1)
}
  0x22   :  { %36 = dma.hbm_to_vmem [thread:$0]  %s1071_s2, 128, %s34_s8, [#allocation6]  }
  0x23   :  { %804 = dma.done.wait [#allocation3], 512  }
  0x24   :  { %805 = vsyncadd [#allocation3], 4294966784 }
  0x25   :  { %806 = dma.done.wait [#allocation6], 128  }
  0x26   :  { %807 = vsyncadd [#allocation6], 4294967168  ;;  %v82_v0 = vlaneseq  ;;  %vm127_vm0 = vcmask 253952   ;;  %vm52_vm1 = vcmask 261120   ;;  %v51_v4 = vld [vmem:[%s1070_s1] sm:$0x1] }
  0x27   :  { %v48_v5 = vld [vmem:[#allocation2 + $0x8] sm:$0xff]  ;;  %v49_v6 = vld [vmem:[#allocation2 + $0x10] sm:$0xff]  ;;  %v128_v7 = vsel %vm127_vm0, %v51_v4, 0.0  ;;  %v47_v9 = vld [vmem:[#allocation2] sm:$0xff]  ;;  %v814_v48 = vmov 0   ;;  %vm222_vm2 = vcmask 1041409  }
  0x28   :  { %v870_v1 = vshrl.u32 %v82_v0, 7  ;;  %v205_v2 = vand.u32 127, %v82_v0  ;;  %v56_v8 = vsel %vm52_vm1, %v48_v5, 0.0  ;;  %129 = vadd.xlane.f32.xlu0 %v128_v7  ;;  %v59_v11 = vsel %vm52_vm1, %v49_v6, 0.0  ;;  %v50_v14 = vld [vmem:[#allocation2 + $0x18] sm:$0xff]  ;;  %v151_v32 = vld [vmem:[#allocation5] sm:$0xff]  ;;  %726 = vset.pattern.permute.xlu1 %v814_v48 }
  0x29   :  { %57 = vadd.xlane.f32.xlu1 %v56_v8  ;;  %v53_v12 = vsel %vm52_vm1, %v47_v9, 0.0  ;;  %v65_v13 = vmul.f32 %v47_v9, %v47_v9  ;;  %v62_v17 = vsel %vm52_vm1, %v50_v14, 0.0  ;;  %v67_v18 = vmul.f32 %v49_v6, %v49_v6  ;;  %727 = vset.pattern.permute.xlu0 %v814_v48  ;;  %s815_s22 = smov [#allocation7]  }
  0x2a   :  { %v873_v3 = vsub.s32 %v205_v2, %v870_v1  ;;  %v880_v10 = vsub.s32 0, %v870_v1  ;;  %v66_v19 = vmul.f32 %v48_v5, %v48_v5  ;;  %v68_v23 = vmul.f32 %v50_v14, %v50_v14  ;;  %s707_s23 = sshll.u32 %s815_s22, 4  ;;  %s708_s23 = int_to_ptr.vmem [resolvable:$true] %s707_s23 }
  0x2b   :  { %v69_v16 = vsel %vm52_vm1, %v65_v13, 0.0  ;;  %v75_v20 = vsel %vm52_vm1, %v67_v18, 0.0  ;;  %v896_v34 = vsub.s32 2, %v870_v1  ;;  %v900_v36 = vsub.s32 3, %v870_v1  ;;  %s782_s24 = scalar_lea.vmem %s708_s23, 64  ;;  %p787_p3 = scmp.lt.s32.totalorder %s708_s23, %s708_s23 }
  0x2c   :  { %v85_v15 = vrot.slane %v51_v4, %v880_v10  ;;  %54 = vadd.xlane.f32.xlu0 %v53_v12  ;;  %v72_v21 = vsel %vm52_vm1, %v66_v19, 0.0  ;;  %v78_v25 = vsel %vm52_vm1, %v68_v23, 0.0  ;;  %v172_v33 = vrot.slane %v151_v32, %v880_v10  ;;  %p783_p2 = scmp.ne.s32.totalorder %s708_s23, %s782_s24  ;;  %p788_p4 = scmp.lt.s32.totalorder %s782_s24, %s782_s24 }
  0x2d   :  { %60 = vadd.xlane.f32.xlu1 %v59_v11  ;;  %v315_v35 = vrot.slane %v151_v32, %v896_v34  ;;  %v903_v37 = vsub.s32 1, %v870_v1  ;;  %v381_v38 = vrot.slane %v151_v32, %v900_v36  ;;  %v907_v39 = vsub.s32 4, %v870_v1 }
  0x2e   :  { %v87_v22 = vmul.f32 %v85_v15, %v47_v9  ;;  %v89_v26 = vmul.f32 %v85_v15, %v49_v6  ;;  %v88_v27 = vmul.f32 %v85_v15, %v48_v5  ;;  %v90_v30 = vmul.f32 %v85_v15, %v50_v14  ;;  %p789_p5 = por %p788_p4, %p787_p3 }
  0x2f   :  { %v249_v40 = vrot.slane %v151_v32, %v903_v37  ;;  %v911_v41 = vsub.s32 5, %v870_v1  ;;  %v447_v42 = vrot.slane %v151_v32, %v907_v39  ;;  %v915_v43 = vsub.s32 6, %v870_v1 }
  0x30   :  { %63 = vadd.xlane.f32.xlu0 %v62_v17  ;;  %v91_v24 = vsel %vm52_vm1, %v87_v22, 0.0  ;;  %v97_v28 = vsel %vm52_vm1, %v89_v26, 0.0  ;;  %v94_v29 = vsel %vm52_vm1, %v88_v27, 0.0  ;;  %v100_v31 = vsel %vm52_vm1, %v90_v30, 0.0  ;;  %p790_p6 = pnand %p789_p5, %p783_p2 }
  0x31   :  { %70 = vadd.xlane.f32.xlu1 %v69_v16  ;;  %v513_v44 = vrot.slane %v151_v32, %v911_v41  ;;  %v919_v45 = vsub.s32 7, %v870_v1  ;;  %v579_v46 = vrot.slane %v151_v32, %v915_v43  ;;  %vm224_vm3 = vcmask 1042434  }
  0x32   :  { %vm226_vm4 = vcmask 1043459   ;;  %vm699_vm5 = vcmask 60416  }
  0x33   :  { %v645_v47 = vrot.slane %v151_v32, %v919_v45 }
  0x34   :  { %73 = vadd.xlane.f32.xlu0 %v72_v21 }
  0x35   :  { %76 = vadd.xlane.f32.xlu1 %v75_v20 }
  0x38   :  { %79 = vadd.xlane.f32.xlu0 %v78_v25 }
  0x39   :  { %92 = vadd.xlane.f32.xlu1 %v91_v24 }
  0x3c   :  { %95 = vadd.xlane.f32.xlu0 %v94_v29 }
  0x3d   :  { %98 = vadd.xlane.f32.xlu1 %v97_v28 }
  0x40   :  { %101 = vadd.xlane.f32.xlu0 %v100_v31 }
  0x4e   :  { %175 = vbcast.lane.b32.xlu1 %v172_v33, 256 }
  0x52   :  { %318 = vbcast.lane.b32.xlu1 %v315_v35, 256 }
  0x56   :  { %384 = vbcast.lane.b32.xlu1 %v381_v38, 256  ;;  %252 = vbcast.lane.b32.xlu0 %v249_v40, 256 }
  0x5a   :  { %450 = vbcast.lane.b32.xlu1 %v447_v42, 256  ;;  %516 = vbcast.lane.b32.xlu0 %v513_v44, 256 }
  0x5e   :  { %582 = vbcast.lane.b32.xlu1 %v579_v46, 256  ;;  %648 = vbcast.lane.b32.xlu0 %v645_v47, 256 }
  0xb5   :  { %v130_v49 = vpop.xlane.xlu0 %129 }
  0xb6   :  { %v131_v50 = vrot.slane %v130_v49, 4  ;;  %v58_v56 = vpop.xlane.xlu1 %57 }
  0xb7   :  { %v104_v0 = vmul.f32 0.03125, %v58_v56 }
  0xb8   :  { %v132_v51 = vadd.f32 %v131_v50, %v130_v49 }
  0xb9   :  { %v55_v57 = vpop.xlane.xlu0 %54  ;;  %v112_v9 = vmul.f32 %v104_v0, %v104_v0 }
  0xba   :  { %v133_v52 = vrot.slane %v132_v51, 2  ;;  %v61_v58 = vpop.xlane.xlu1 %60  ;;  %v103_v61 = vmul.f32 0.03125, %v55_v57 }
  0xbb   :  { %v105_v63 = vmul.f32 0.03125, %v61_v58 }
  0xbc   :  { %v134_v53 = vadd.f32 %v133_v52, %v132_v51  ;;  %v111_v2 = vmul.f32 %v103_v61, %v103_v61 }
  0xbd   :  { %v64_v59 = vpop.xlane.xlu0 %63  ;;  %v113_v7 = vmul.f32 %v105_v63, %v105_v63 }
  0xbe   :  { %v135_v54 = vrot.slane %v134_v53, 1  ;;  %v71_v60 = vpop.xlane.xlu1 %70  ;;  %v106_v1 = vmul.f32 0.03125, %v64_v59 }
  0xbf   :  { %v107_v4 = vmul.f32 0.03125, %v71_v60 }
  0xc0   :  { %v136_v55 = vadd.f32 %v135_v54, %v134_v53  ;;  %v114_v12 = vmul.f32 %v106_v1, %v106_v1 }
  0xc1   :  { %v74_v62 = vpop.xlane.xlu0 %73  ;;  %v115_v14 = vsub.f32 %v107_v4, %v111_v2 }
  0xc2   :  { %718 = vpush %v136_v55  ;;  %v77_v5 = vpop.xlane.xlu1 %76  ;;  %v108_v11 = vmul.f32 0.03125, %v74_v62 }
  0xc3   :  { %v109_v8 = vmul.f32 0.03125, %v77_v5  ;;  %v119_v18 = vadd.f32 1e-05, %v115_v14 }
  0xc4   :  { %v116_v16 = vsub.f32 %v108_v11, %v112_v9 }
  0xc5   :  { %v80_v6 = vpop.xlane.xlu0 %79  ;;  %v117_v15 = vsub.f32 %v109_v8, %v113_v7  ;;  %728 = vrsqrt.f32 %v119_v18 }
  0xc6   :  { %v110_v13 = vmul.f32 0.03125, %v80_v6  ;;  %v120_v20 = vadd.f32 1e-05, %v116_v16  ;;  %v93_v22 = vpop.xlane.xlu1 %92 }
  0xc7   :  { %v121_v19 = vadd.f32 1e-05, %v117_v15 }
  0xc8   :  { %v118_v17 = vsub.f32 %v110_v13, %v114_v12 }
  0xc9   :  { %730 = vrsqrt.f32 %v121_v19  ;;  %v96_v23 = vpop.xlane.xlu0 %95 }
  0xca   :  { %v122_v21 = vadd.f32 1e-05, %v118_v17  ;;  %732 = vrsqrt.f32 %v120_v20  ;;  %v99_v30 = vpop.xlane.xlu1 %98 }
  0xcc   :  { %734 = vrsqrt.f32 %v122_v21 }
  0xcd   :  { %v102_v32 = vpop.xlane.xlu0 %101 }
  0xce   :  { %v176_v51 = vpop.permute.xlu1 %175 }
  0xcf   :  { %v729_v29 = vpop.eup %728 }
  0xd1   :  { %v253_v57 = vpop.permute.xlu0 %252 }
  0xd2   :  { %v319_v2 = vpop.permute.xlu1 %318 }
  0xd3   :  { %v731_v31 = vpop.eup %730 }
  0xd4   :  { %v733_v40 = vpop.eup %732 }
  0xd6   :  { %v735_v44 = vpop.eup %734  ;;  %v385_v12 = vpop.permute.xlu1 %384 }
  0xda   :  { %v451_v20 = vpop.permute.xlu1 %450 }
  0xf3   :  { %s719_s1 = spop %718 }
  0xf4   :  { %v138_v24 = vstv %s719_s1 }
  0xf5   :  { %v139_v25 = vmul.f32 %v138_v24, %v103_v61  ;;  %v140_v26 = vmul.f32 %v138_v24, %v104_v0  ;;  %v141_v27 = vmul.f32 %v138_v24, %v105_v63  ;;  %v142_v28 = vmul.f32 %v138_v24, %v106_v1 }
  0xf7   :  { %v143_v33 = vsub.f32 %v93_v22, %v139_v25  ;;  %v144_v35 = vsub.f32 %v96_v23, %v140_v26  ;;  %v145_v38 = vsub.f32 %v99_v30, %v141_v27  ;;  %v146_v42 = vsub.f32 %v102_v32, %v142_v28  ;;  %v517_v28 = vpop.permute.xlu0 %516 }
  0xf9   :  { %v923_v46 = vmul.f32 %v729_v29, %v143_v33  ;;  %v925_v47 = vmul.f32 %v733_v40, %v144_v35  ;;  %v927_v48 = vmul.f32 %v731_v31, %v145_v38  ;;  %v933_v52 = vmul.f32 %v735_v44, %v146_v42  ;;  %v583_v40 = vpop.permute.xlu1 %582 }
  0xfb   :  { %v156_v49 = vrot.slane %v923_v46, %v880_v10  ;;  %v160_v50 = vrot.slane %v925_v47, %v880_v10  ;;  %v164_v55 = vrot.slane %v927_v48, %v880_v10  ;;  %v233_v56 = vrot.slane %v923_v46, %v903_v37 }
  0xfc   :  { %v168_v60 = vrot.slane %v933_v52, %v880_v10  ;;  %v241_v61 = vrot.slane %v927_v48, %v903_v37  ;;  %v237_v0 = vrot.slane %v925_v47, %v903_v37  ;;  %v299_v1 = vrot.slane %v923_v46, %v896_v34 }
  0xfd   :  { %v178_v53 = vmul.f32 %v176_v51, %v156_v49  ;;  %v179_v54 = vmul.f32 %v176_v51, %v160_v50  ;;  %v180_v58 = vmul.f32 %v176_v51, %v164_v55  ;;  %v255_v59 = vmul.f32 %v253_v57, %v233_v56  ;;  %v649_v55 = vpop.permute.xlu0 %648 }
  0xfe   :  { %v181_v62 = vmul.f32 %v176_v51, %v168_v60  ;;  %v257_v63 = vmul.f32 %v253_v57, %v241_v61  ;;  %v256_v4 = vmul.f32 %v253_v57, %v237_v0  ;;  %v321_v5 = vmul.f32 %v319_v2, %v299_v1 }
  0xff   :  { %193 = vperm.xlu1 %726, %v178_v53   ;;  %196 = vperm.xlu0 %727, %v179_v54   ;;  %v245_v10 = vrot.slane %v933_v52, %v903_v37  ;;  %v307_v6 = vrot.slane %v927_v48, %v896_v34  ;;  %v303_v9 = vrot.slane %v925_v47, %v896_v34 }
 0x100   :  { %v365_v11 = vrot.slane %v923_v46, %v900_v36  ;;  %v311_v37 = vrot.slane %v933_v52, %v896_v34  ;;  %v373_v15 = vrot.slane %v927_v48, %v900_v36  ;;  %v369_v18 = vrot.slane %v925_v47, %v900_v36 }
 0x101   :  { %v258_v7 = vmul.f32 %v253_v57, %v245_v10  ;;  %v323_v8 = vmul.f32 %v319_v2, %v307_v6  ;;  %v322_v13 = vmul.f32 %v319_v2, %v303_v9  ;;  %v431_v19 = vrot.slane %v923_v46, %v907_v39 }
 0x102   :  { %v387_v14 = vmul.f32 %v385_v12, %v365_v11  ;;  %v324_v16 = vmul.f32 %v319_v2, %v311_v37  ;;  %v389_v17 = vmul.f32 %v385_v12, %v373_v15  ;;  %v388_v21 = vmul.f32 %v385_v12, %v369_v18 }
 0x103   :  { %199 = vperm.xlu1 %726, %v180_v58   ;;  %264 = vperm.xlu0 %727, %v255_v59   ;;  %v453_v22 = vmul.f32 %v451_v20, %v431_v19  ;;  %v377_v34 = vrot.slane %v933_v52, %v900_v36  ;;  %v439_v23 = vrot.slane %v927_v48, %v907_v39 }
 0x104   :  { %v435_v26 = vrot.slane %v925_v47, %v907_v39  ;;  %v497_v27 = vrot.slane %v923_v46, %v911_v41  ;;  %v443_v36 = vrot.slane %v933_v52, %v907_v39  ;;  %v505_v31 = vrot.slane %v927_v48, %v911_v41 }
 0x105   :  { %v390_v24 = vmul.f32 %v385_v12, %v377_v34  ;;  %v455_v25 = vmul.f32 %v451_v20, %v439_v23  ;;  %v501_v35 = vrot.slane %v925_v47, %v911_v41  ;;  %v563_v38 = vrot.slane %v923_v46, %v915_v43 }
 0x106   :  { %v454_v29 = vmul.f32 %v451_v20, %v435_v26  ;;  %v519_v30 = vmul.f32 %v517_v28, %v497_v27  ;;  %v456_v32 = vmul.f32 %v451_v20, %v443_v36  ;;  %v521_v33 = vmul.f32 %v517_v28, %v505_v31 }
 0x107   :  { %202 = vperm.xlu1 %726, %v181_v62   ;;  %270 = vperm.xlu0 %727, %v257_v63   ;;  %v520_v42 = vmul.f32 %v517_v28, %v501_v35  ;;  %v585_v44 = vmul.f32 %v583_v40, %v563_v38  ;;  %v509_v39 = vrot.slane %v933_v52, %v911_v41 }
 0x108   :  { %v571_v49 = vrot.slane %v927_v48, %v915_v43  ;;  %v567_v53 = vrot.slane %v925_v47, %v915_v43  ;;  %v629_v54 = vrot.slane %v923_v46, %v919_v45  ;;  %v575_v41 = vrot.slane %v933_v52, %v915_v43 }
 0x109   :  { %v522_v50 = vmul.f32 %v517_v28, %v509_v39  ;;  %v637_v58 = vrot.slane %v927_v48, %v919_v45  ;;  %v633_v61 = vrot.slane %v925_v47, %v919_v45  ;;  %v641_v62 = vrot.slane %v933_v52, %v919_v45 }
 0x10a   :  { %v587_v51 = vmul.f32 %v583_v40, %v571_v49  ;;  %v586_v56 = vmul.f32 %v583_v40, %v567_v53  ;;  %v651_v57 = vmul.f32 %v649_v55, %v629_v54  ;;  %v588_v59 = vmul.f32 %v583_v40, %v575_v41  ;;  %v717_v40 = vld [vmem:[%s1072_s3] ss:$0 sm:$0xff] }
 0x10b   :  { %267 = vperm.xlu1 %726, %v256_v4   ;;  %330 = vperm.xlu0 %727, %v321_v5   ;;  %v653_v60 = vmul.f32 %v649_v55, %v637_v58  ;;  %v652_v46 = vmul.f32 %v649_v55, %v633_v61  ;;  %v654_v63 = vmul.f32 %v649_v55, %v641_v62 }
 0x10f   :  { %273 = vperm.xlu1 %726, %v258_v7   ;;  %336 = vperm.xlu0 %727, %v323_v8  }
 0x113   :  { %333 = vperm.xlu1 %726, %v322_v13   ;;  %396 = vperm.xlu0 %727, %v387_v14  }
 0x117   :  { %339 = vperm.xlu1 %726, %v324_v16   ;;  %402 = vperm.xlu0 %727, %v389_v17  }
 0x11b   :  { %399 = vperm.xlu1 %726, %v388_v21   ;;  %462 = vperm.xlu0 %727, %v453_v22  }
 0x11f   :  { %405 = vperm.xlu1 %726, %v390_v24   ;;  %468 = vperm.xlu0 %727, %v455_v25  }
 0x123   :  { %465 = vperm.xlu1 %726, %v454_v29   ;;  %528 = vperm.xlu0 %727, %v519_v30  }
 0x127   :  { %471 = vperm.xlu1 %726, %v456_v32   ;;  %534 = vperm.xlu0 %727, %v521_v33  }
 0x12b   :  { %531 = vperm.xlu1 %726, %v520_v42   ;;  %594 = vperm.xlu0 %727, %v585_v44  }
 0x12f   :  { %537 = vperm.xlu1 %726, %v522_v50   ;;  %600 = vperm.xlu0 %727, %v587_v51  }
 0x133   :  { %597 = vperm.xlu1 %726, %v586_v56   ;;  %660 = vperm.xlu0 %727, %v651_v57  }
 0x137   :  { %603 = vperm.xlu1 %726, %v588_v59   ;;  %666 = vperm.xlu0 %727, %v653_v60  }
 0x13b   :  { %663 = vperm.xlu1 %726, %v652_v46  }
 0x13f   :  { %669 = vperm.xlu1 %726, %v654_v63  }
 0x17e   :  { %v194_v43 = vpop.permute.xlu1 %193  ;;  %v197_v0 = vpop.permute.xlu0 %196 }
 0x17f   :  { %v209_v20 = vrot.slane %v194_v43, %v873_v3  ;;  %v213_v21 = vrot.slane %v197_v0, %v873_v3 }
 0x181   :  { %v223_v29 = vsel %vm222_vm2, %v213_v21, %v209_v20 }
 0x182   :  { %v200_v1 = vpop.permute.xlu1 %199  ;;  %v265_v48 = vpop.permute.xlu0 %264 }
 0x183   :  { %v217_v34 = vrot.slane %v200_v1, %v873_v3  ;;  %v278_v23 = vrot.slane %v265_v48, %v873_v3 }
 0x185   :  { %v225_v33 = vsel %vm224_vm3, %v217_v34, %v223_v29 }
 0x186   :  { %v203_v2 = vpop.permute.xlu1 %202  ;;  %v271_v4 = vpop.permute.xlu0 %270 }
 0x187   :  { %v221_v24 = vrot.slane %v203_v2, %v873_v3  ;;  %v286_v30 = vrot.slane %v271_v4, %v873_v3 }
 0x189   :  { %v227_v42 = vsel %vm226_vm4, %v221_v24, %v225_v33 }
 0x18a   :  { %v268_v5 = vpop.permute.xlu1 %267  ;;  %v331_v10 = vpop.permute.xlu0 %330  ;;  %v229_v41 = vadd.f32 %v717_v40, %v227_v42 }
 0x18b   :  { %v282_v17 = vrot.slane %v268_v5, %v873_v3  ;;  %v344_v25 = vrot.slane %v331_v10, %v873_v3 }
 0x18d   :  { %v291_v26 = vsel %vm222_vm2, %v282_v17, %v278_v23 }
 0x18e   :  { %v274_v6 = vpop.permute.xlu1 %273  ;;  %v337_v7 = vpop.permute.xlu0 %336  ;;  %v292_v44 = vsel %vm224_vm3, %v286_v30, %v291_v26 }
 0x18f   :  { %v290_v27 = vrot.slane %v274_v6, %v873_v3  ;;  %v352_v35 = vrot.slane %v337_v7, %v873_v3 }
 0x191   :  { %v293_v50 = vsel %vm226_vm4, %v290_v27, %v292_v44 }
 0x192   :  { %v334_v47 = vpop.permute.xlu1 %333  ;;  %v397_v8 = vpop.permute.xlu0 %396  ;;  %v295_v43 = vadd.f32 %v293_v50, %v229_v41 }
 0x193   :  { %v348_v22 = vrot.slane %v334_v47, %v873_v3  ;;  %v410_v39 = vrot.slane %v397_v8, %v873_v3 }
 0x195   :  { %v357_v36 = vsel %vm222_vm2, %v348_v22, %v344_v25 }
 0x196   :  { %v340_v9 = vpop.permute.xlu1 %339  ;;  %v403_v11 = vpop.permute.xlu0 %402  ;;  %v358_v51 = vsel %vm224_vm3, %v352_v35, %v357_v36 }
 0x197   :  { %v356_v38 = vrot.slane %v340_v9, %v873_v3  ;;  %v418_v59 = vrot.slane %v403_v11, %v873_v3 }
 0x199   :  { %v359_v58 = vsel %vm226_vm4, %v356_v38, %v358_v51 }
 0x19a   :  { %v400_v12 = vpop.permute.xlu1 %399  ;;  %v463_v13 = vpop.permute.xlu0 %462  ;;  %v361_v6 = vadd.f32 %v359_v58, %v295_v43 }
 0x19b   :  { %v414_v31 = vrot.slane %v400_v12, %v873_v3  ;;  %v476_v55 = vrot.slane %v463_v13, %v873_v3 }
 0x19d   :  { %v423_v54 = vsel %vm222_vm2, %v414_v31, %v410_v39 }
 0x19e   :  { %v406_v45 = vpop.permute.xlu1 %405  ;;  %v469_v52 = vpop.permute.xlu0 %468  ;;  %v424_v0 = vsel %vm224_vm3, %v418_v59, %v423_v54 }
 0x19f   :  { %v422_v56 = vrot.slane %v406_v45, %v873_v3  ;;  %v484_v1 = vrot.slane %v469_v52, %v873_v3 }
 0x1a1   :  { %v425_v2 = vsel %vm226_vm4, %v422_v56, %v424_v0 }
 0x1a2   :  { %v466_v14 = vpop.permute.xlu1 %465  ;;  %v529_v37 = vpop.permute.xlu0 %528  ;;  %v427_v12 = vadd.f32 %v425_v2, %v361_v6 }
 0x1a3   :  { %v480_v49 = vrot.slane %v466_v14, %v873_v3  ;;  %v542_v61 = vrot.slane %v529_v37, %v873_v3 }
 0x1a5   :  { %v489_v60 = vsel %vm222_vm2, %v480_v49, %v476_v55 }
 0x1a6   :  { %v472_v15 = vpop.permute.xlu1 %471  ;;  %v535_v16 = vpop.permute.xlu0 %534  ;;  %v490_v7 = vsel %vm224_vm3, %v484_v1, %v489_v60 }
 0x1a7   :  { %v488_v46 = vrot.slane %v472_v15, %v873_v3  ;;  %v550_v47 = vrot.slane %v535_v16, %v873_v3 }
 0x1a9   :  { %v491_v8 = vsel %vm226_vm4, %v488_v46, %v490_v7 }
 0x1aa   :  { %v532_v18 = vpop.permute.xlu1 %531  ;;  %v595_v19 = vpop.permute.xlu0 %594  ;;  %v493_v16 = vadd.f32 %v491_v8, %v427_v12 }
 0x1ab   :  { %v546_v57 = vrot.slane %v532_v18, %v873_v3  ;;  %v608_v5 = vrot.slane %v595_v19, %v873_v3 }
 0x1ad   :  { %v555_v4 = vsel %vm222_vm2, %v546_v57, %v542_v61 }
 0x1ae   :  { %v538_v28 = vpop.permute.xlu1 %537  ;;  %v601_v32 = vpop.permute.xlu0 %600  ;;  %v556_v13 = vsel %vm224_vm3, %v550_v47, %v555_v4 }
 0x1af   :  { %v554_v10 = vrot.slane %v538_v28, %v873_v3  ;;  %v616_v45 = vrot.slane %v601_v32, %v873_v3  ;;  %v693_v28 = vld [vmem:[%s1073_s4] sm:$0xf] }
 0x1b0   :  { %v694_v29 = vmul.f32 0.5, %v693_v28 }
 0x1b1   :  { %v557_v14 = vsel %vm226_vm4, %v554_v10, %v556_v13 }
 0x1b2   :  { %v598_v53 = vpop.permute.xlu1 %597  ;;  %v661_v63 = vpop.permute.xlu0 %660  ;;  %v559_v21 = vadd.f32 %v557_v14, %v493_v16 }
 0x1b3   :  { %v612_v62 = vrot.slane %v598_v53, %v873_v3  ;;  %v674_v37 = vrot.slane %v661_v63, %v873_v3 }
 0x1b5   :  { %v621_v9 = vsel %vm222_vm2, %v612_v62, %v608_v5 }
 0x1b6   :  { %v604_v48 = vpop.permute.xlu1 %603  ;;  %v667_v15 = vpop.permute.xlu0 %666  ;;  %v622_v18 = vsel %vm224_vm3, %v616_v45, %v621_v9 }
 0x1b7   :  { %v620_v11 = vrot.slane %v604_v48, %v873_v3  ;;  %v682_v22 = vrot.slane %v667_v15, %v873_v3 }
 0x1b9   :  { %v623_v19 = vsel %vm226_vm4, %v620_v11, %v622_v18 }
 0x1ba   :  { %v664_v52 = vpop.permute.xlu1 %663  ;;  %v625_v24 = vadd.f32 %v623_v19, %v559_v21 }
 0x1bb   :  { %v678_v17 = vrot.slane %v664_v52, %v873_v3 }
 0x1bd   :  { %v687_v20 = vsel %vm222_vm2, %v678_v17, %v674_v37 }
 0x1be   :  { %v670_v34 = vpop.permute.xlu1 %669  ;;  %v688_v25 = vsel %vm224_vm3, %v682_v22, %v687_v20 }
 0x1bf   :  { %v686_v23 = vrot.slane %v670_v34, %v873_v3 }
 0x1c1   :  { %v689_v26 = vsel %vm226_vm4, %v686_v23, %v688_v25 }
 0x1c2   :  { %v691_v27 = vadd.f32 %v689_v26, %v625_v24 }
 0x1c4   :  { %736 = vtanh.f32 %v691_v27 }
 0x1ce   :  { %v737_v30 = vpop.eup %736 }
 0x1cf   :  { %v695_v36 = vadd.f32 %v737_v30, %v694_v29 }
 0x1d1   :  { %v696_v31 = vadd.f32 0.5, %v695_v36 }
 0x1d3   :  { %v697_v32 = vmax.f32 %v696_v31, 0.0 }
 0x1d5   :  { %v698_v3 = vmin.f32 %v697_v32, 1.0 }
 0x1d7   :  { %700 = vst.msk [vmem:[#allocation7] sm:$0xf] %vm699_vm5, %v698_v3 }
 0x1d8   :  { %793 = shalt.err (!%p790_p6)
}
 0x1d9   :  { %s794_s26 = scalar_lea.hbm %s1074_s5, 64 }
 0x1da   :  { %p795_p7 = scmp.ne.s32.totalorder %s1074_s5, %s794_s26  ;;  %p798_p8 = scmp.lt.u32.totalorder %s794_s26, %s1074_s5 }
 0x1dc   :  { %p800_p9 = pnand %p798_p8, %p795_p7 }
 0x1de   :  { %803 = shalt.err (!%p800_p9)
}
 0x1df   :  { %710 = dma.vmem_to_hbm [thread:$0]  %s708_s23, 64, %s1074_s5, [#allocation4]  }
 0x1e0   :  { %808 = dma.done.wait [#allocation4], 64  }
 0x1e1   :  { %809 = vsyncadd [#allocation4], 4294967232 }
 0x1e2   :  { %714 = vsyncpa [#allocation3], 1 }
 0x1e3   :  { %715 = vsyncpa [#allocation6], 1 }
 0x1e4   :  { %716 = vsyncpa [#allocation4], 1 }

</bundles_post_ra>
